<compile_context>
chip_gen: v6e
topology: v6e:2x2x1
jax: 0.10.0
libtpu: 0.0.40
codegen_flags: <defaults>
</compile_context>

<pallas_src>
import math
from functools import partial

import jax
import jax.numpy as jnp
from jax import lax
from jax.experimental import pallas as pl
from jax.experimental.pallas import tpu as pltpu


# ----------------------------------------------------------------------------
# VMEM sizing helpers (per-generation ceiling, query-tile choice).
# ----------------------------------------------------------------------------
def _vmem_ceiling_bytes():
    cap = 64 * 2 ** 20  # conservative default = v7x physical VMEM per TensorCore
    try:
        info_fn = getattr(pltpu, "get_tpu_info", None)
        if info_fn is not None:
            cap_attr = getattr(info_fn(), "vmem_capacity_bytes", None)
            if cap_attr:
                cap = int(cap_attr)
    except Exception:
        pass
    return (cap * 3) // 4  # headroom for Mosaic internal scratch


def _pair_vmem_bytes(L, D, Lq):
    # Per-grid-step footprint estimate: double-buffered IO + live temporaries.
    io = 2 * (2 * L * D * 4)             # s, t f32 input blocks
    io += 2 * (2 * L * 4)                # mask row + col
    io += 2 * (Lq * L * 4)               # local_score output block
    io += 2 * (L * 4 + 128 * 4)          # global_score + sq-diff outputs
    operands = 2 * (L + Lq) * D * 2      # scaled bf16 key/query operands
    temps = 8 * Lq * L * 4               # m, s_sc, t_sc, d, z/e, soft, lm, iota/select
    return io + operands + temps + (2 << 20)


def _choose_query_tile(L, D, ceiling):
    cands = [L]
    for c in (L // 2, L // 4, 512, 384, 256, 128, 64, 32, 16, 8):
        if 0 < c < L and L % c == 0 and c % 8 == 0 and c not in cands:
            cands.append(c)
    cands = sorted(set(cands), reverse=True)
    for lq in cands:  # biggest tile that fits the VMEM ceiling
        if _pair_vmem_bytes(L, D, lq) <= ceiling:
            return lq
    return cands[-1]


# ----------------------------------------------------------------------------
# Fused pair-interaction kernel, per (batch, query-tile):
#   - per-head student & teacher masked/scaled self-score matrices (MXU bf16 in,
#     f32 accumulation) and on-chip sum((s - t)^2),
#   - teacher softmax summed over heads -> masked local_score (diag zeroed in-kernel)
#   - global_score (query-summed, pre-diag-zero) accumulated across query tiles.
# The B*H*L*L score tensors never touch HBM.
# ----------------------------------------------------------------------------
def _make_pair_kernel(n_heads, dh, L, Lq):
    scale = float(dh) ** -0.25           # (s*c)(s*c)^T == s s^T / sqrt(dh)
    dn = (((1,), (1,)), ((), ()))        # contract last dims of both operands (A @ B^T)

    def kernel(s_ref, t_ref, mrow_ref, mcol_ref, local_ref, global_ref, sqdiff_ref):
        qi = pl.program_id(1)
        q0 = pl.multiple_of(qi * Lq, Lq)

        mrow = mrow_ref[0]                                    # [1, L]
        if Lq == L:
            mcol_q = mcol_ref[0]                              # [L, 1]
        else:
            mcol_q = mcol_ref[0, pl.ds(q0, Lq), :]            # [Lq, 1]
        m = mcol_q * mrow                                     # [Lq, L] pairwise 0/1 mask
        neg_row = (1.0 - mrow) * (-10000.0)                   # [1, L] key-side -inf proxy

        @pl.when(qi == 0)
        def _():
            global_ref[...] = jnp.zeros_like(global_ref)
            sqdiff_ref[...] = jnp.zeros_like(sqdiff_ref)

        # Cast + scale to bf16 once per grid step (MXU operands, f32 accumulation).
        s_keys = (s_ref[0] * scale).astype(jnp.bfloat16)      # [L, D]
        t_keys = (t_ref[0] * scale).astype(jnp.bfloat16)
        if Lq == L:
            s_qrys, t_qrys = s_keys, t_keys
        else:
            s_qrys = (s_ref[0, pl.ds(q0, Lq), :] * scale).astype(jnp.bfloat16)
            t_qrys = (t_ref[0, pl.ds(q0, Lq), :] * scale).astype(jnp.bfloat16)

        tot = jnp.zeros((1, 1), jnp.float32)

        for h in range(n_heads):                              # short static loop
            lo = h * dh
            s_sc = lax.dot_general(s_qrys[:, lo:lo + dh], s_keys[:, lo:lo + dh], dn,
                                   preferred_element_type=jnp.float32)   # [Lq, L]
            t_sc = lax.dot_general(t_qrys[:, lo:lo + dh], t_keys[:, lo:lo + dh], dn,
                                   preferred_element_type=jnp.float32)

            # Masked score difference (mask applied once to the difference).
            d = (s_sc - t_sc) * m
            tot = tot + jnp.sum(jnp.sum(d * d, axis=0, keepdims=True),
                                axis=1, keepdims=True)        # [1, 1]

            # Teacher softmax only (student softmax/top-k are discarded upstream).
            z = t_sc + neg_row
            z = z - jnp.max(z, axis=-1, keepdims=True)
            e = jnp.exp(z)
            soft = e * pl.reciprocal(jnp.sum(e, axis=-1, keepdims=True), approx=True)
            if h == 0:                                        # accumulate in output ref
                local_ref[0] = soft
            else:
                local_ref[0] += soft

        lm = local_ref[0] * m                                 # mask hoisted out of head loop
        global_ref[0] += jnp.sum(lm, axis=0, keepdims=True)   # pre-diag-zero global score

        # Diagonal zeroing fused into the kernel (reference: local_score[:, i, i] = 0).
        row_ids = lax.broadcasted_iota(jnp.int32, (Lq, L), 0) + q0
        col_ids = lax.broadcasted_iota(jnp.int32, (Lq, L), 1)
        local_ref[0] = jnp.where(row_ids == col_ids, 0.0, lm)

        sqdiff_ref[0] += tot + jnp.zeros((1, 128), jnp.float32)  # dense 128-lane store

    return kernel


def _pair_interaction_pallas(s_rep, t_rep, attention_mask, n_relation_heads):
    B, L, D = s_rep.shape
    assert D % n_relation_heads == 0
    dh = D // n_relation_heads

    m32 = attention_mask.astype(jnp.float32)
    mrow = m32.reshape(B, 1, L)
    mcol = m32.reshape(B, L, 1)

    ceiling = _vmem_ceiling_bytes()
    Lq = _choose_query_tile(L, D, ceiling)
    nq = L // Lq
    need = _pair_vmem_bytes(L, D, Lq)
    vmem_limit = int(min(ceiling, max(2 * need, 32 * 2 ** 20)))

    kernel = _make_pair_kernel(n_relation_heads, dh, L, Lq)

    flops = 4 * B * L * L * D                          # s & t self-score matmuls, all heads
    transcendentals = B * n_relation_heads * L * L     # exp
    bytes_accessed = (2 * B * L * D * 4                # hidden states in (no extra cast pass)
                      + 2 * B * L * 4                  # mask row / col
                      + B * L * L * 4                  # teacher local_score out
                      + B * L * 4 + B * 128 * 4)       # global_score + per-batch sq-diff

    local_score, global_score, sqdiff = pl.pallas_call(
        kernel,
        out_shape=(
            jax.ShapeDtypeStruct((B, L, L), jnp.float32),
            jax.ShapeDtypeStruct((B, 1, L), jnp.float32),
            jax.ShapeDtypeStruct((B, 1, 128), jnp.float32),
        ),
        grid=(B, nq),
        in_specs=[
            pl.BlockSpec((1, L, D), lambda b, q: (b, 0, 0)),   # resident across q (no re-DMA)
            pl.BlockSpec((1, L, D), lambda b, q: (b, 0, 0)),
            pl.BlockSpec((1, 1, L), lambda b, q: (b, 0, 0)),
            pl.BlockSpec((1, L, 1), lambda b, q: (b, 0, 0)),
        ],
        out_specs=(
            pl.BlockSpec((1, Lq, L), lambda b, q: (b, q, 0)),
            pl.BlockSpec((1, 1, L), lambda b, q: (b, 0, 0)),   # resident accumulator over q
            pl.BlockSpec((1, 1, 128), lambda b, q: (b, 0, 0)), # resident accumulator over q
        ),
        compiler_params=pltpu.CompilerParams(
            dimension_semantics=("parallel", "arbitrary"),
            vmem_limit_bytes=vmem_limit,
        ),
        cost_estimate=pl.CostEstimate(
            flops=flops,
            transcendentals=transcendentals,
            bytes_accessed=bytes_accessed,
        ),
    )(s_rep, t_rep, mrow, mcol)

    # [B,L,L] diag-zeroed masked local_score, [B,L] global_score, [B] squared-diff sums
    return local_score, global_score[:, 0, :], sqdiff[:, 0, 0]


# ----------------------------------------------------------------------------
# Glue in plain JAX: top-k selection, gathers, triplet angle (tiny tensors).
# ----------------------------------------------------------------------------
def _calculate_tripletangleseq(hidden, attention_mask, global_topk, local_topk):
    # n_relation_heads is 1 in the reference forward call; the singleton head dim is
    # dropped.  Tensors here are tiny (B x k1 x k2 x k2) so this stays in XLA.
    B, L, D = hidden.shape
    k1 = global_topk.shape[1]
    k2 = local_topk.shape[2]

    h1 = jnp.take_along_axis(hidden, global_topk[:, :, None], axis=1)      # [B,k1,D]
    hg = jnp.take_along_axis(
        hidden, local_topk.reshape(B, k1 * k2)[:, :, None], axis=1
    ).reshape(B, k1, k2, D)                                                # [B,k1,k2,D]
    sd = h1[:, :, None, :] - hg                                            # [B,k1,k2,D]

    # F.normalize(p=2, dim=-1, eps=1e-12) semantics (zero vectors -> zero).
    sq = jnp.sum(sd * sd, axis=-1, keepdims=True)
    sdn = sd * lax.rsqrt(jnp.maximum(sq, 1e-24))
    angle = jnp.einsum('bxid,bxjd->bxij', sdn, sdn)                        # [B,k1,k2,k2]

    am1 = jnp.take_along_axis(attention_mask, global_topk, axis=1)         # [B,k1]
    me = am1[:, :, None] + attention_mask[:, None, :]                      # [B,k1,L]
    me_g = jnp.take_along_axis(me, local_topk, axis=2)                     # [B,k1,k2]
    mask_mat = (me_g[:, :, :, None] * me_g[:, :, None, :] == 4.0).astype(jnp.float32)

    nz = (angle != 0.0).astype(jnp.float32)
    nz = nz * (1.0 - jnp.eye(k2, dtype=jnp.float32))
    mask_full = mask_mat * nz
    angle = angle * mask_full
    return angle, mask_full


def token_phrase_loss(s_rep, t_rep, attention_mask, n_relation_heads, k1, k2):
    attention_mask = attention_mask.astype(jnp.float32)
    B, L, D = s_rep.shape
    k1 = min(k1, L)
    k2 = min(k2, L)

    t_rep_ng = lax.stop_gradient(t_rep)

    # Fused pair-interaction kernel: teacher local/global scores + sum((s - t)^2).
    local_score, global_score, sqdiff_per_batch = _pair_interaction_pallas(
        s_rep, t_rep_ng, attention_mask, n_relation_heads)

    # sum(attention_mask_extended) == H * sum_b (sum_i m_bi)^2 — no [B,L,L] mask needed.
    mask_ext_sum = n_relation_heads * jnp.sum(jnp.sum(attention_mask, axis=-1) ** 2)
    loss_pair = jnp.sum(sqdiff_per_batch) / mask_ext_sum

    # Teacher top-k anchors / neighbours (student top-k is discarded by the reference).
    _, global_topk = lax.top_k(global_score, k1)                             # [B,k1]
    local_rows = jnp.take_along_axis(local_score, global_topk[:, :, None], axis=1)  # [B,k1,L]
    _, local_topk = lax.top_k(local_rows, k2)                                # [B,k1,k2]

    s_angle, s_mask = _calculate_tripletangleseq(
        s_rep, attention_mask, global_topk, local_topk)
    t_angle, _ = _calculate_tripletangleseq(
        t_rep_ng, attention_mask, global_topk, local_topk)

    d = s_angle - t_angle
    ad = jnp.abs(d)
    smooth_l1 = jnp.where(ad < 1.0, 0.5 * d * d, ad - 0.5)    # beta=1.0 (torch default)
    # Note: like the reference module, this is 0/0 if every selected pair is masked out.
    loss_triplet = jnp.sum(smooth_l1) / jnp.sum(s_mask)

    return loss_pair + loss_triplet


if __name__ == "__main__":
    # Module hyper-parameters (deterministic, in-script)
    n_relation_heads = 4
    k1, k2 = 4, 3

    # Small shapes consistent with the forward: [batch, seq, hidden]
    B, L, D = 2, 8, 32
    key = jax.random.PRNGKey(0)
    k_s, k_t = jax.random.split(key)
    s_rep = jax.random.normal(k_s, (B, L, D), dtype=jnp.float32)
    t_rep = jax.random.normal(k_t, (B, L, D), dtype=jnp.float32)
    # attention mask with some padding to exercise masking
    lengths = jnp.array([8, 6])
    attention_mask = (jnp.arange(L)[None, :] < lengths[:, None]).astype(jnp.float32)

    loss_fn = jax.jit(partial(token_phrase_loss,
                              n_relation_heads=n_relation_heads, k1=k1, k2=k2))
    loss = loss_fn(s_rep, t_rep, attention_mask)
    jax.block_until_ready(loss)
    assert loss.shape == () and bool(jnp.isfinite(loss))
    print("KERNEL_OK")
</pallas_src>

<mosaic_0001>
module attributes {stable_mosaic.version = 11 : i64} {
  func.func @kernel(%arg0: i32, %arg1: i32, %arg2: memref<1x8x32xf32, #tpu.memory_space<vmem>>, %arg3: memref<1x8x32xf32, #tpu.memory_space<vmem>>, %arg4: memref<1x1x8xf32, #tpu.memory_space<vmem>>, %arg5: memref<1x8x1xf32, #tpu.memory_space<vmem>>, %arg6: memref<1x8x8xf32, #tpu.memory_space<vmem>>, %arg7: memref<1x1x8xf32, #tpu.memory_space<vmem>>, %arg8: memref<1x1x128xf32, #tpu.memory_space<vmem>>) attributes {dimension_semantics = [#tpu.dimension_semantics<parallel>, #tpu.dimension_semantics<arbitrary>], iteration_bounds = array<i64: 2, 1>, scalar_prefetch = 0 : i64, scratch_operands = 0 : i64, tpu.core_type = #tpu.core_type<tc>, window_params = [{transform_indices = @transform_0, window_bounds = array<i64: 1, 8, 32>}, {transform_indices = @transform_1, window_bounds = array<i64: 1, 8, 32>}, {transform_indices = @transform_2, window_bounds = array<i64: 1, 1, 8>}, {transform_indices = @transform_3, window_bounds = array<i64: 1, 8, 1>}, {transform_indices = @transform_4, window_bounds = array<i64: 1, 8, 8>}, {transform_indices = @transform_5, window_bounds = array<i64: 1, 1, 8>}, {transform_indices = @transform_6, window_bounds = array<i64: 1, 1, 128>}]} {
    %c8_i32 = arith.constant 8 : i32
    %0 = arith.muli %arg1, %c8_i32 : i32
    %1 = tpu.assume_multiple %0, 8 : i32
    %c0 = arith.constant 0 : index
    %c0_0 = arith.constant 0 : index
    %c0_1 = arith.constant 0 : index
    %2 = vector.load %arg4[%c0, %c0_0, %c0_1] : memref<1x1x8xf32, #tpu.memory_space<vmem>>, vector<1x1x8xf32>
    %3 = vector.shape_cast %2 : vector<1x1x8xf32> to vector<1x8xf32>
    %c0_2 = arith.constant 0 : index
    %c0_3 = arith.constant 0 : index
    %c0_4 = arith.constant 0 : index
    %4 = vector.load %arg5[%c0_2, %c0_3, %c0_4] : memref<1x8x1xf32, #tpu.memory_space<vmem>>, vector<1x8x1xf32>
    %5 = vector.shape_cast %4 : vector<1x8x1xf32> to vector<8x1xf32>
    %6 = vector.broadcast %5 : vector<8x1xf32> to vector<8x8xf32>
    %7 = vector.broadcast %3 : vector<1x8xf32> to vector<8x8xf32>
    %8 = arith.mulf %6, %7 : vector<8x8xf32>
    %cst = arith.constant 1.000000e+00 : f32
    %9 = vector.broadcast %cst : f32 to vector<1x8xf32>
    %10 = arith.subf %9, %3 : vector<1x8xf32>
    %cst_5 = arith.constant -1.000000e+04 : f32
    %11 = vector.broadcast %cst_5 : f32 to vector<1x8xf32>
    %12 = arith.mulf %10, %11 : vector<1x8xf32>
    %c0_i32 = arith.constant 0 : i32
    %13 = arith.cmpi eq, %arg1, %c0_i32 : i32
    %14 = arith.extui %13 : i1 to i32
    %c0_i32_6 = arith.constant 0 : i32
    %15 = arith.cmpi ne, %14, %c0_i32_6 : i32
    scf.if %15 {
      %cst_82 = arith.constant 0.000000e+00 : f32
      %182 = vector.broadcast %cst_82 : f32 to vector<1x1x8xf32>
      %c0_83 = arith.constant 0 : index
      %c0_84 = arith.constant 0 : index
      %c0_85 = arith.constant 0 : index
      %183 = vector.load %arg7[%c0_83, %c0_84, %c0_85] : memref<1x1x8xf32, #tpu.memory_space<vmem>>, vector<1x1x8xf32>
      tpu.vector_store %arg7[%c0_83, %c0_84, %c0_85], %182 {strides = array<i32>} : memref<1x1x8xf32, #tpu.memory_space<vmem>>, vector<1x1x8xf32>,
      %cst_86 = arith.constant 0.000000e+00 : f32
      %184 = vector.broadcast %cst_86 : f32 to vector<1x1x128xf32>
      %c0_87 = arith.constant 0 : index
      %c0_88 = arith.constant 0 : index
      %c0_89 = arith.constant 0 : index
      %185 = vector.load %arg8[%c0_87, %c0_88, %c0_89] : memref<1x1x128xf32, #tpu.memory_space<vmem>>, vector<1x1x128xf32>
      tpu.vector_store %arg8[%c0_87, %c0_88, %c0_89], %184 {strides = array<i32>} : memref<1x1x128xf32, #tpu.memory_space<vmem>>, vector<1x1x128xf32>,
    } else {
    }
    %c0_7 = arith.constant 0 : index
    %c0_8 = arith.constant 0 : index
    %c0_9 = arith.constant 0 : index
    %16 = vector.load %arg2[%c0_7, %c0_8, %c0_9] : memref<1x8x32xf32, #tpu.memory_space<vmem>>, vector<1x8x32xf32>
    %17 = vector.shape_cast %16 : vector<1x8x32xf32> to vector<8x32xf32>
    %cst_10 = arith.constant 0.594603539 : f32
    %18 = vector.broadcast %cst_10 : f32 to vector<8x32xf32>
    %19 = arith.mulf %17, %18 : vector<8x32xf32>
    %20 = arith.truncf %19 : vector<8x32xf32> to vector<8x32xbf16>
    %c0_11 = arith.constant 0 : index
    %c0_12 = arith.constant 0 : index
    %c0_13 = arith.constant 0 : index
    %21 = vector.load %arg3[%c0_11, %c0_12, %c0_13] : memref<1x8x32xf32, #tpu.memory_space<vmem>>, vector<1x8x32xf32>
    %22 = vector.shape_cast %21 : vector<1x8x32xf32> to vector<8x32xf32>
    %cst_14 = arith.constant 0.594603539 : f32
    %23 = vector.broadcast %cst_14 : f32 to vector<8x32xf32>
    %24 = arith.mulf %22, %23 : vector<8x32xf32>
    %25 = arith.truncf %24 : vector<8x32xf32> to vector<8x32xbf16>
    %cst_15 = arith.constant 0.000000e+00 : f32
    %26 = vector.broadcast %cst_15 : f32 to vector<1x1xf32>
    %27 = vector.extract_strided_slice %20 {offsets = [0, 0], sizes = [8, 8], strides = [1, 1]} : vector<8x32xbf16> to vector<8x8xbf16>
    %28 = vector.extract_strided_slice %20 {offsets = [0, 0], sizes = [8, 8], strides = [1, 1]} : vector<8x32xbf16> to vector<8x8xbf16>
    %cst_16 = arith.constant dense<0.000000e+00> : vector<8x8xf32>
    %29 = tpu.matmul %27, %28, %cst_16 {dimension_numbers = #tpu.dot_dimension_numbers<[1], [1], [0], [0], [0, 0, 1, 0], [], []>} : vector<8x8xbf16>, vector<8x8xbf16>, vector<8x8xf32> -> vector<8x8xf32>
    %30 = vector.extract_strided_slice %25 {offsets = [0, 0], sizes = [8, 8], strides = [1, 1]} : vector<8x32xbf16> to vector<8x8xbf16>
    %31 = vector.extract_strided_slice %25 {offsets = [0, 0], sizes = [8, 8], strides = [1, 1]} : vector<8x32xbf16> to vector<8x8xbf16>
    %cst_17 = arith.constant dense<0.000000e+00> : vector<8x8xf32>
    %32 = tpu.matmul %30, %31, %cst_17 {dimension_numbers = #tpu.dot_dimension_numbers<[1], [1], [0], [0], [0, 0, 1, 0], [], []>} : vector<8x8xbf16>, vector<8x8xbf16>, vector<8x8xf32> -> vector<8x8xf32>
    %33 = arith.subf %29, %32 : vector<8x8xf32>
    %34 = arith.mulf %33, %8 : vector<8x8xf32>
    %35 = arith.mulf %34, %34 : vector<8x8xf32>
    %cst_18 = arith.constant dense<0.000000e+00> : vector<8xf32>
    %36 = vector.multi_reduction <add>, %35, %cst_18 [0] : vector<8x8xf32> to vector<8xf32>
    %37 = vector.shape_cast %36 : vector<8xf32> to vector<1x8xf32>
    %cst_19 = arith.constant dense<0.000000e+00> : vector<1xf32>
    %38 = vector.multi_reduction <add>, %37, %cst_19 [1] : vector<1x8xf32> to vector<1xf32>
    %39 = vector.shape_cast %38 : vector<1xf32> to vector<1x1xf32>
    %40 = arith.addf %26, %39 : vector<1x1xf32>
    %41 = vector.broadcast %12 : vector<1x8xf32> to vector<8x8xf32>
    %42 = arith.addf %32, %41 : vector<8x8xf32>
    %cst_20 = arith.constant dense<0xFF800000> : vector<8xf32>
    %43 = vector.multi_reduction <maximumf>, %42, %cst_20 [1] : vector<8x8xf32> to vector<8xf32>
    %44 = vector.shape_cast %43 : vector<8xf32> to vector<8x1xf32>
    %45 = vector.broadcast %44 : vector<8x1xf32> to vector<8x8xf32>
    %46 = arith.subf %42, %45 : vector<8x8xf32>
    %47 = math.exp %46 : vector<8x8xf32>
    %cst_21 = arith.constant dense<0.000000e+00> : vector<8xf32>
    %48 = vector.multi_reduction <add>, %47, %cst_21 [1] : vector<8x8xf32> to vector<8xf32>
    %49 = vector.shape_cast %48 : vector<8xf32> to vector<8x1xf32>
    %50 = tpu.reciprocal %49 {approx = true} : vector<8x1xf32> -> vector<8x1xf32>
    %51 = vector.broadcast %50 : vector<8x1xf32> to vector<8x8xf32>
    %52 = arith.mulf %47, %51 : vector<8x8xf32>
    %c0_22 = arith.constant 0 : index
    %c0_23 = arith.constant 0 : index
    %c0_24 = arith.constant 0 : index
    %53 = vector.load %arg6[%c0_22, %c0_23, %c0_24] : memref<1x8x8xf32, #tpu.memory_space<vmem>>, vector<1x8x8xf32>
    %54 = vector.shape_cast %53 : vector<1x8x8xf32> to vector<8x8xf32>
    %55 = vector.shape_cast %52 : vector<8x8xf32> to vector<1x8x8xf32>
    tpu.vector_store %arg6[%c0_22, %c0_23, %c0_24], %55 {strides = array<i32>} : memref<1x8x8xf32, #tpu.memory_space<vmem>>, vector<1x8x8xf32>,
    %56 = vector.extract_strided_slice %20 {offsets = [0, 8], sizes = [8, 8], strides = [1, 1]} : vector<8x32xbf16> to vector<8x8xbf16>
    %57 = vector.extract_strided_slice %20 {offsets = [0, 8], sizes = [8, 8], strides = [1, 1]} : vector<8x32xbf16> to vector<8x8xbf16>
    %cst_25 = arith.constant dense<0.000000e+00> : vector<8x8xf32>
    %58 = tpu.matmul %56, %57, %cst_25 {dimension_numbers = #tpu.dot_dimension_numbers<[1], [1], [0], [0], [0, 0, 1, 0], [], []>} : vector<8x8xbf16>, vector<8x8xbf16>, vector<8x8xf32> -> vector<8x8xf32>
    %59 = vector.extract_strided_slice %25 {offsets = [0, 8], sizes = [8, 8], strides = [1, 1]} : vector<8x32xbf16> to vector<8x8xbf16>
    %60 = vector.extract_strided_slice %25 {offsets = [0, 8], sizes = [8, 8], strides = [1, 1]} : vector<8x32xbf16> to vector<8x8xbf16>
    %cst_26 = arith.constant dense<0.000000e+00> : vector<8x8xf32>
    %61 = tpu.matmul %59, %60, %cst_26 {dimension_numbers = #tpu.dot_dimension_numbers<[1], [1], [0], [0], [0, 0, 1, 0], [], []>} : vector<8x8xbf16>, vector<8x8xbf16>, vector<8x8xf32> -> vector<8x8xf32>
    %62 = arith.subf %58, %61 : vector<8x8xf32>
    %63 = arith.mulf %62, %8 : vector<8x8xf32>
    %64 = arith.mulf %63, %63 : vector<8x8xf32>
    %cst_27 = arith.constant dense<0.000000e+00> : vector<8xf32>
    %65 = vector.multi_reduction <add>, %64, %cst_27 [0] : vector<8x8xf32> to vector<8xf32>
    %66 = vector.shape_cast %65 : vector<8xf32> to vector<1x8xf32>
    %cst_28 = arith.constant dense<0.000000e+00> : vector<1xf32>
    %67 = vector.multi_reduction <add>, %66, %cst_28 [1] : vector<1x8xf32> to vector<1xf32>
    %68 = vector.shape_cast %67 : vector<1xf32> to vector<1x1xf32>
    %69 = arith.addf %40, %68 : vector<1x1xf32>
    %70 = vector.broadcast %12 : vector<1x8xf32> to vector<8x8xf32>
    %71 = arith.addf %61, %70 : vector<8x8xf32>
    %cst_29 = arith.constant dense<0xFF800000> : vector<8xf32>
    %72 = vector.multi_reduction <maximumf>, %71, %cst_29 [1] : vector<8x8xf32> to vector<8xf32>
    %73 = vector.shape_cast %72 : vector<8xf32> to vector<8x1xf32>
    %74 = vector.broadcast %73 : vector<8x1xf32> to vector<8x8xf32>
    %75 = arith.subf %71, %74 : vector<8x8xf32>
    %76 = math.exp %75 : vector<8x8xf32>
    %cst_30 = arith.constant dense<0.000000e+00> : vector<8xf32>
    %77 = vector.multi_reduction <add>, %76, %cst_30 [1] : vector<8x8xf32> to vector<8xf32>
    %78 = vector.shape_cast %77 : vector<8xf32> to vector<8x1xf32>
    %79 = tpu.reciprocal %78 {approx = true} : vector<8x1xf32> -> vector<8x1xf32>
    %80 = vector.broadcast %79 : vector<8x1xf32> to vector<8x8xf32>
    %81 = arith.mulf %76, %80 : vector<8x8xf32>
    %c0_31 = arith.constant 0 : index
    %c0_32 = arith.constant 0 : index
    %c0_33 = arith.constant 0 : index
    %82 = vector.load %arg6[%c0_31, %c0_32, %c0_33] : memref<1x8x8xf32, #tpu.memory_space<vmem>>, vector<1x8x8xf32>
    %83 = vector.shape_cast %82 : vector<1x8x8xf32> to vector<8x8xf32>
    %84 = arith.addf %83, %81 : vector<8x8xf32>
    %c0_34 = arith.constant 0 : index
    %c0_35 = arith.constant 0 : index
    %c0_36 = arith.constant 0 : index
    %85 = vector.load %arg6[%c0_34, %c0_35, %c0_36] : memref<1x8x8xf32, #tpu.memory_space<vmem>>, vector<1x8x8xf32>
    %86 = vector.shape_cast %85 : vector<1x8x8xf32> to vector<8x8xf32>
    %87 = vector.shape_cast %84 : vector<8x8xf32> to vector<1x8x8xf32>
    tpu.vector_store %arg6[%c0_34, %c0_35, %c0_36], %87 {strides = array<i32>} : memref<1x8x8xf32, #tpu.memory_space<vmem>>, vector<1x8x8xf32>,
    %88 = vector.extract_strided_slice %20 {offsets = [0, 16], sizes = [8, 8], strides = [1, 1]} : vector<8x32xbf16> to vector<8x8xbf16>
    %89 = vector.extract_strided_slice %20 {offsets = [0, 16], sizes = [8, 8], strides = [1, 1]} : vector<8x32xbf16> to vector<8x8xbf16>
    %cst_37 = arith.constant dense<0.000000e+00> : vector<8x8xf32>
    %90 = tpu.matmul %88, %89, %cst_37 {dimension_numbers = #tpu.dot_dimension_numbers<[1], [1], [0], [0], [0, 0, 1, 0], [], []>} : vector<8x8xbf16>, vector<8x8xbf16>, vector<8x8xf32> -> vector<8x8xf32>
    %91 = vector.extract_strided_slice %25 {offsets = [0, 16], sizes = [8, 8], strides = [1, 1]} : vector<8x32xbf16> to vector<8x8xbf16>
    %92 = vector.extract_strided_slice %25 {offsets = [0, 16], sizes = [8, 8], strides = [1, 1]} : vector<8x32xbf16> to vector<8x8xbf16>
    %cst_38 = arith.constant dense<0.000000e+00> : vector<8x8xf32>
    %93 = tpu.matmul %91, %92, %cst_38 {dimension_numbers = #tpu.dot_dimension_numbers<[1], [1], [0], [0], [0, 0, 1, 0], [], []>} : vector<8x8xbf16>, vector<8x8xbf16>, vector<8x8xf32> -> vector<8x8xf32>
    %94 = arith.subf %90, %93 : vector<8x8xf32>
    %95 = arith.mulf %94, %8 : vector<8x8xf32>
    %96 = arith.mulf %95, %95 : vector<8x8xf32>
    %cst_39 = arith.constant dense<0.000000e+00> : vector<8xf32>
    %97 = vector.multi_reduction <add>, %96, %cst_39 [0] : vector<8x8xf32> to vector<8xf32>
    %98 = vector.shape_cast %97 : vector<8xf32> to vector<1x8xf32>
    %cst_40 = arith.constant dense<0.000000e+00> : vector<1xf32>
    %99 = vector.multi_reduction <add>, %98, %cst_40 [1] : vector<1x8xf32> to vector<1xf32>
    %100 = vector.shape_cast %99 : vector<1xf32> to vector<1x1xf32>
    %101 = arith.addf %69, %100 : vector<1x1xf32>
    %102 = vector.broadcast %12 : vector<1x8xf32> to vector<8x8xf32>
    %103 = arith.addf %93, %102 : vector<8x8xf32>
    %cst_41 = arith.constant dense<0xFF800000> : vector<8xf32>
    %104 = vector.multi_reduction <maximumf>, %103, %cst_41 [1] : vector<8x8xf32> to vector<8xf32>
    %105 = vector.shape_cast %104 : vector<8xf32> to vector<8x1xf32>
    %106 = vector.broadcast %105 : vector<8x1xf32> to vector<8x8xf32>
    %107 = arith.subf %103, %106 : vector<8x8xf32>
    %108 = math.exp %107 : vector<8x8xf32>
    %cst_42 = arith.constant dense<0.000000e+00> : vector<8xf32>
    %109 = vector.multi_reduction <add>, %108, %cst_42 [1] : vector<8x8xf32> to vector<8xf32>
    %110 = vector.shape_cast %109 : vector<8xf32> to vector<8x1xf32>
    %111 = tpu.reciprocal %110 {approx = true} : vector<8x1xf32> -> vector<8x1xf32>
    %112 = vector.broadcast %111 : vector<8x1xf32> to vector<8x8xf32>
    %113 = arith.mulf %108, %112 : vector<8x8xf32>
    %c0_43 = arith.constant 0 : index
    %c0_44 = arith.constant 0 : index
    %c0_45 = arith.constant 0 : index
    %114 = vector.load %arg6[%c0_43, %c0_44, %c0_45] : memref<1x8x8xf32, #tpu.memory_space<vmem>>, vector<1x8x8xf32>
    %115 = vector.shape_cast %114 : vector<1x8x8xf32> to vector<8x8xf32>
    %116 = arith.addf %115, %113 : vector<8x8xf32>
    %c0_46 = arith.constant 0 : index
    %c0_47 = arith.constant 0 : index
    %c0_48 = arith.constant 0 : index
    %117 = vector.load %arg6[%c0_46, %c0_47, %c0_48] : memref<1x8x8xf32, #tpu.memory_space<vmem>>, vector<1x8x8xf32>
    %118 = vector.shape_cast %117 : vector<1x8x8xf32> to vector<8x8xf32>
    %119 = vector.shape_cast %116 : vector<8x8xf32> to vector<1x8x8xf32>
    tpu.vector_store %arg6[%c0_46, %c0_47, %c0_48], %119 {strides = array<i32>} : memref<1x8x8xf32, #tpu.memory_space<vmem>>, vector<1x8x8xf32>,
    %120 = vector.extract_strided_slice %20 {offsets = [0, 24], sizes = [8, 8], strides = [1, 1]} : vector<8x32xbf16> to vector<8x8xbf16>
    %121 = vector.extract_strided_slice %20 {offsets = [0, 24], sizes = [8, 8], strides = [1, 1]} : vector<8x32xbf16> to vector<8x8xbf16>
    %cst_49 = arith.constant dense<0.000000e+00> : vector<8x8xf32>
    %122 = tpu.matmul %120, %121, %cst_49 {dimension_numbers = #tpu.dot_dimension_numbers<[1], [1], [0], [0], [0, 0, 1, 0], [], []>} : vector<8x8xbf16>, vector<8x8xbf16>, vector<8x8xf32> -> vector<8x8xf32>
    %123 = vector.extract_strided_slice %25 {offsets = [0, 24], sizes = [8, 8], strides = [1, 1]} : vector<8x32xbf16> to vector<8x8xbf16>
    %124 = vector.extract_strided_slice %25 {offsets = [0, 24], sizes = [8, 8], strides = [1, 1]} : vector<8x32xbf16> to vector<8x8xbf16>
    %cst_50 = arith.constant dense<0.000000e+00> : vector<8x8xf32>
    %125 = tpu.matmul %123, %124, %cst_50 {dimension_numbers = #tpu.dot_dimension_numbers<[1], [1], [0], [0], [0, 0, 1, 0], [], []>} : vector<8x8xbf16>, vector<8x8xbf16>, vector<8x8xf32> -> vector<8x8xf32>
    %126 = arith.subf %122, %125 : vector<8x8xf32>
    %127 = arith.mulf %126, %8 : vector<8x8xf32>
    %128 = arith.mulf %127, %127 : vector<8x8xf32>
    %cst_51 = arith.constant dense<0.000000e+00> : vector<8xf32>
    %129 = vector.multi_reduction <add>, %128, %cst_51 [0] : vector<8x8xf32> to vector<8xf32>
    %130 = vector.shape_cast %129 : vector<8xf32> to vector<1x8xf32>
    %cst_52 = arith.constant dense<0.000000e+00> : vector<1xf32>
    %131 = vector.multi_reduction <add>, %130, %cst_52 [1] : vector<1x8xf32> to vector<1xf32>
    %132 = vector.shape_cast %131 : vector<1xf32> to vector<1x1xf32>
    %133 = arith.addf %101, %132 : vector<1x1xf32>
    %134 = vector.broadcast %12 : vector<1x8xf32> to vector<8x8xf32>
    %135 = arith.addf %125, %134 : vector<8x8xf32>
    %cst_53 = arith.constant dense<0xFF800000> : vector<8xf32>
    %136 = vector.multi_reduction <maximumf>, %135, %cst_53 [1] : vector<8x8xf32> to vector<8xf32>
    %137 = vector.shape_cast %136 : vector<8xf32> to vector<8x1xf32>
    %138 = vector.broadcast %137 : vector<8x1xf32> to vector<8x8xf32>
    %139 = arith.subf %135, %138 : vector<8x8xf32>
    %140 = math.exp %139 : vector<8x8xf32>
    %cst_54 = arith.constant dense<0.000000e+00> : vector<8xf32>
    %141 = vector.multi_reduction <add>, %140, %cst_54 [1] : vector<8x8xf32> to vector<8xf32>
    %142 = vector.shape_cast %141 : vector<8xf32> to vector<8x1xf32>
    %143 = tpu.reciprocal %142 {approx = true} : vector<8x1xf32> -> vector<8x1xf32>
    %144 = vector.broadcast %143 : vector<8x1xf32> to vector<8x8xf32>
    %145 = arith.mulf %140, %144 : vector<8x8xf32>
    %c0_55 = arith.constant 0 : index
    %c0_56 = arith.constant 0 : index
    %c0_57 = arith.constant 0 : index
    %146 = vector.load %arg6[%c0_55, %c0_56, %c0_57] : memref<1x8x8xf32, #tpu.memory_space<vmem>>, vector<1x8x8xf32>
    %147 = vector.shape_cast %146 : vector<1x8x8xf32> to vector<8x8xf32>
    %148 = arith.addf %147, %145 : vector<8x8xf32>
    %c0_58 = arith.constant 0 : index
    %c0_59 = arith.constant 0 : index
    %c0_60 = arith.constant 0 : index
    %149 = vector.load %arg6[%c0_58, %c0_59, %c0_60] : memref<1x8x8xf32, #tpu.memory_space<vmem>>, vector<1x8x8xf32>
    %150 = vector.shape_cast %149 : vector<1x8x8xf32> to vector<8x8xf32>
    %151 = vector.shape_cast %148 : vector<8x8xf32> to vector<1x8x8xf32>
    tpu.vector_store %arg6[%c0_58, %c0_59, %c0_60], %151 {strides = array<i32>} : memref<1x8x8xf32, #tpu.memory_space<vmem>>, vector<1x8x8xf32>,
    %c0_61 = arith.constant 0 : index
    %c0_62 = arith.constant 0 : index
    %c0_63 = arith.constant 0 : index
    %152 = vector.load %arg6[%c0_61, %c0_62, %c0_63] : memref<1x8x8xf32, #tpu.memory_space<vmem>>, vector<1x8x8xf32>
    %153 = vector.shape_cast %152 : vector<1x8x8xf32> to vector<8x8xf32>
    %154 = arith.mulf %153, %8 : vector<8x8xf32>
    %c0_64 = arith.constant 0 : index
    %c0_65 = arith.constant 0 : index
    %c0_66 = arith.constant 0 : index
    %155 = vector.load %arg7[%c0_64, %c0_65, %c0_66] : memref<1x1x8xf32, #tpu.memory_space<vmem>>, vector<1x1x8xf32>
    %156 = vector.shape_cast %155 : vector<1x1x8xf32> to vector<1x8xf32>
    %cst_67 = arith.constant dense<0.000000e+00> : vector<8xf32>
    %157 = vector.multi_reduction <add>, %154, %cst_67 [0] : vector<8x8xf32> to vector<8xf32>
    %158 = vector.shape_cast %157 : vector<8xf32> to vector<1x8xf32>
    %159 = arith.addf %156, %158 : vector<1x8xf32>
    %c0_68 = arith.constant 0 : index
    %c0_69 = arith.constant 0 : index
    %c0_70 = arith.constant 0 : index
    %160 = vector.load %arg7[%c0_68, %c0_69, %c0_70] : memref<1x1x8xf32, #tpu.memory_space<vmem>>, vector<1x1x8xf32>
    %161 = vector.shape_cast %160 : vector<1x1x8xf32> to vector<1x8xf32>
    %162 = vector.shape_cast %159 : vector<1x8xf32> to vector<1x1x8xf32>
    tpu.vector_store %arg7[%c0_68, %c0_69, %c0_70], %162 {strides = array<i32>} : memref<1x1x8xf32, #tpu.memory_space<vmem>>, vector<1x1x8xf32>,
    %163 = tpu.iota {dimensions = array<i32: 0>} : vector<8x8xi32>
    %164 = vector.broadcast %1 : i32 to vector<8x8xi32>
    %165 = arith.addi %163, %164 : vector<8x8xi32>
    %166 = tpu.iota {dimensions = array<i32: 1>} : vector<8x8xi32>
    %167 = arith.cmpi eq, %165, %166 : vector<8x8xi32>
    %cst_71 = arith.constant 0.000000e+00 : f32
    %168 = vector.broadcast %cst_71 : f32 to vector<8x8xf32>
    %169 = arith.select %167, %168, %154 : vector<8x8xi1>, vector<8x8xf32>
    %c0_72 = arith.constant 0 : index
    %c0_73 = arith.constant 0 : index
    %c0_74 = arith.constant 0 : index
    %170 = vector.load %arg6[%c0_72, %c0_73, %c0_74] : memref<1x8x8xf32, #tpu.memory_space<vmem>>, vector<1x8x8xf32>
    %171 = vector.shape_cast %170 : vector<1x8x8xf32> to vector<8x8xf32>
    %172 = vector.shape_cast %169 : vector<8x8xf32> to vector<1x8x8xf32>
    tpu.vector_store %arg6[%c0_72, %c0_73, %c0_74], %172 {strides = array<i32>} : memref<1x8x8xf32, #tpu.memory_space<vmem>>, vector<1x8x8xf32>,
    %c0_75 = arith.constant 0 : index
    %c0_76 = arith.constant 0 : index
    %c0_77 = arith.constant 0 : index
    %173 = vector.load %arg8[%c0_75, %c0_76, %c0_77] : memref<1x1x128xf32, #tpu.memory_space<vmem>>, vector<1x1x128xf32>
    %174 = vector.shape_cast %173 : vector<1x1x128xf32> to vector<1x128xf32>
    %cst_78 = arith.constant 0.000000e+00 : f32
    %175 = vector.broadcast %cst_78 : f32 to vector<1x128xf32>
    %176 = vector.broadcast %133 : vector<1x1xf32> to vector<1x128xf32>
    %177 = arith.addf %176, %175 : vector<1x128xf32>
    %178 = arith.addf %174, %177 : vector<1x128xf32>
    %c0_79 = arith.constant 0 : index
    %c0_80 = arith.constant 0 : index
    %c0_81 = arith.constant 0 : index
    %179 = vector.load %arg8[%c0_79, %c0_80, %c0_81] : memref<1x1x128xf32, #tpu.memory_space<vmem>>, vector<1x1x128xf32>
    %180 = vector.shape_cast %179 : vector<1x1x128xf32> to vector<1x128xf32>
    %181 = vector.shape_cast %178 : vector<1x128xf32> to vector<1x1x128xf32>
    tpu.vector_store %arg8[%c0_79, %c0_80, %c0_81], %181 {strides = array<i32>} : memref<1x1x128xf32, #tpu.memory_space<vmem>>, vector<1x1x128xf32>,
    return
  }
  func.func @transform_0(%arg0: i32, %arg1: i32) -> (i32, i32, i32) {
    %c0_i32 = arith.constant 0 : i32
    %c0_i32_0 = arith.constant 0 : i32
    %c0_i32_1 = arith.constant 0 : i32
    return %arg0, %c0_i32, %c0_i32_0 : i32, i32, i32
  }
  func.func @transform_1(%arg0: i32, %arg1: i32) -> (i32, i32, i32) {
    %c0_i32 = arith.constant 0 : i32
    %c0_i32_0 = arith.constant 0 : i32
    %c0_i32_1 = arith.constant 0 : i32
    return %arg0, %c0_i32, %c0_i32_0 : i32, i32, i32
  }
  func.func @transform_2(%arg0: i32, %arg1: i32) -> (i32, i32, i32) {
    %c0_i32 = arith.constant 0 : i32
    %c0_i32_0 = arith.constant 0 : i32
    %c0_i32_1 = arith.constant 0 : i32
    return %arg0, %c0_i32, %c0_i32_0 : i32, i32, i32
  }
  func.func @transform_3(%arg0: i32, %arg1: i32) -> (i32, i32, i32) {
    %c0_i32 = arith.constant 0 : i32
    %c0_i32_0 = arith.constant 0 : i32
    %c0_i32_1 = arith.constant 0 : i32
    return %arg0, %c0_i32, %c0_i32_0 : i32, i32, i32
  }
  func.func @transform_4(%arg0: i32, %arg1: i32) -> (i32, i32, i32) {
    %c0_i32 = arith.constant 0 : i32
    %c0_i32_0 = arith.constant 0 : i32
    return %arg0, %arg1, %c0_i32 : i32, i32, i32
  }
  func.func @transform_5(%arg0: i32, %arg1: i32) -> (i32, i32, i32) {
    %c0_i32 = arith.constant 0 : i32
    %c0_i32_0 = arith.constant 0 : i32
    %c0_i32_1 = arith.constant 0 : i32
    return %arg0, %c0_i32, %c0_i32_0 : i32, i32, i32
  }
  func.func @transform_6(%arg0: i32, %arg1: i32) -> (i32, i32, i32) {
    %c0_i32 = arith.constant 0 : i32
    %c0_i32_0 = arith.constant 0 : i32
    %c0_i32_1 = arith.constant 0 : i32
    return %arg0, %c0_i32, %c0_i32_0 : i32, i32, i32
  }
}

</mosaic_0001>

<bundles_post_ra>
// kernel: sub.14
= control target key start
LH: loop header
LB: loop body
LE: loop exit
PB: predicated region body
PF: predicated region fallthrough
CT: control target
= control target key end

     0   :  { %s106_s0 = inlined_call_operand.vmem [shape: f32[2,4,32], index: 0, kind: input, shape index: {}]   ;;  %s107_s1 = inlined_call_operand.vmem [shape: f32[2,4,3,32], index: 1, kind: output, shape index: {}]  }
   0x1   :  { %v4_v0 = vld [vmem:[%s106_s0] sm:$0x3]  ;;  %v34_v1 = vld [vmem:[%s106_s0 + $0x2] sm:$0x3]  ;;  %v36_v2 = vld [vmem:[%s106_s0 + $0x4] sm:$0x3] }
   0x2   :  { %5 = vst [vmem:[%s107_s1] sm:$0x3] %v4_v0  ;;  %35 = vst [vmem:[%s107_s1 + $0x6] sm:$0x3] %v34_v1  ;;  %v38_v3 = vld [vmem:[%s106_s0 + $0x6] sm:$0x3] }
   0x3   :  { %37 = vst [vmem:[%s107_s1 + $0xc] sm:$0x3] %v36_v2  ;;  %40 = vst [vmem:[%s107_s1 + $0x2] sm:$0x3] %v4_v0 }
   0x4   :  { %41 = vst [vmem:[%s107_s1 + $0x8] sm:$0x3] %v34_v1  ;;  %42 = vst [vmem:[%s107_s1 + $0xe] sm:$0x3] %v36_v2 }
   0x5   :  { %44 = vst [vmem:[%s107_s1 + $0x4] sm:$0x3] %v4_v0  ;;  %45 = vst [vmem:[%s107_s1 + $0xa] sm:$0x3] %v34_v1 }
   0x6   :  { %46 = vst [vmem:[%s107_s1 + $0x10] sm:$0x3] %v36_v2  ;;  %39 = vst [vmem:[%s107_s1 + $0x12] sm:$0x3] %v38_v3 }
   0x7   :  { %43 = vst [vmem:[%s107_s1 + $0x14] sm:$0x3] %v38_v3  ;;  %47 = vst [vmem:[%s107_s1 + $0x16] sm:$0x3] %v38_v3 }

// kernel: token_phrase_loss.1
= control target key start
LH: loop header
LB: loop body
LE: loop exit
PB: predicated region body
PF: predicated region fallthrough
CT: control target
= control target key end

     0   :  { %s1218_s21 = smov 0   ;;  %s1220_s22 = smov 0   ;;  %s1404_s0 = inlined_call_operand.vmem [shape: f32[2,8,32], index: 0, kind: input, shape index: {}]   ;;  %s1405_s1 = inlined_call_operand.vmem [shape: f32[2,8,32], index: 1, kind: input, shape index: {}]   ;;  %s1406_s2 = inlined_call_operand.vmem [shape: f32[2,1,8], index: 2, kind: input, shape index: {}]   ;;  %s1407_s3 = inlined_call_operand.vmem [shape: f32[2,8,1], index: 3, kind: input, shape index: {}]   ;;  %s1408_s4 = inlined_call_operand.vmem [shape: f32[2,8,8], index: 4, kind: output, shape index: {0}]   ;;  %s1409_s5 = inlined_call_operand.vmem [shape: f32[2,1,8], index: 5, kind: output, shape index: {1}]   ;;  %s1410_s6 = inlined_call_operand.vmem [shape: f32[2,1,128], index: 6, kind: output, shape index: {2}]  }
   0x1   :  { %s1222_s23 = smov 0  }
   0x2 LB: > { %s29_s24 = sadd.s32 1, %s1171_s22  ;;  %p1026_p0 = scmp.ge.s32.totalorder %s1175_s23, 1  ;;  %s1175_s23 = sphi %s1222_s23, %s17_s23   ;;  %s1171_s22 = sphi %s1220_s22, %s1412_s22   ;;  %s1167_s21 = sphi %s1218_s21, %s1411_s21  }
   0x3   : > { %p31_p1 = scmp.ge.s32.totalorder %s29_s24, 2  ;;  %p256_p2 = scmp.lt.s32.totalorder %s1175_s23, 3 }
   0x5   : > { %s1414_s24 = smov (%p31_p1, %s29_s24), 0  ;;  %p257_p3 = pnand %p1026_p0, %p256_p2 }
   0x6   : > { %p304_p4 = scmp.lt.s32.totalorder (!%p257_p3), %s1167_s21, 1  ;;  %s1179_s11 = smov (!%p257_p3), 104  }
   0x7   : > { %260 = sbr.rel (%p257_p3) target bundleno = 698 (0x2ba), region = 36  ;;  %s1180_s12 = smov (!%p257_p3), 120  }
   0x8   : > { %s1181_s13 = smov (!%p257_p3), 112  }
   0xc   : > { %v1177_v0 = vmov 0.0   ;;  %vm1178_vm0 = vmmov 0   ;;  %s1416_s21 = smov (!%p304_p4, %s1167_s21), 1  ;;  %vm354_vm1 = vcmask 57344   ;;  %vm363_vm2 = vcmask 64512  }
   0xd   : > { %1063 = vmatprep.subr.bf16.mxu1 %v1177_v0  ;;  %1065 = vmatprep.mubr.msk.bf16.mxu1 %vm1178_vm0, %v1177_v0  ;;  %s1245_s25 = sshll.u32 %s1416_s21, 3  ;;  %s1251_s28 = scalar_lea.vmem %s1409_s5, %s1416_s21  ;;  %v342_v9 = vlaneseq  ;;  %v1182_v40 = vmov 0  }
   0xe   : > { %1057 = vmatprep.subr.bf16.mxu0 %v1177_v0  ;;  %1059 = vmatprep.mubr.msk.bf16.mxu0 %vm1178_vm0, %v1177_v0  ;;  %s311_s7 = scalar_lea.vmem %s1405_s1, %s1245_s25  ;;  %355 = vst.msk [vmem:[%s1251_s28] sm:$0x1] %vm354_vm1, %v1177_v0  ;;  %s307_s10 = scalar_lea.vmem %s1404_s0, %s1245_s25 }
   0xf   : > { %v360_v1 = vld [vmem:[%s311_s7] sm:$0xff]  ;;  %v1274_v10 = vshrl.u32 %v342_v9, 7  ;;  %v1276_v11 = vand.u32 127, %v342_v9  ;;  %s314_s16 = scalar_lea.vmem %s1406_s2, %s1416_s21  ;;  %1135 = vset.pattern.permute.xlu1 %v1182_v40  ;;  %1136 = vset.pattern.permute.xlu0 %v1182_v40  ;;  %s318_s19 = scalar_lea.vmem %s1407_s3, %s1245_s25 }
  0x10   : > { %v361_v2 = vmul.f32 0.59460354, %v360_v1  ;;  %v357_v3 = vld [vmem:[%s307_s10] sm:$0xff]  ;;  %s1360_s27 = scalar_lea.vmem %s1410_s6, %s1416_s21  ;;  %s1368_s7 = scalar_lea.vmem %s1408_s4, %s1245_s25 }
  0x11   : > { %v358_v4 = vmul.f32 0.59460354, %v357_v3  ;;  %vm861_vm3 = vcmp.eq.s32.totalorder %v1274_v10, %v1276_v11  ;;  %v1308_v24 = vld [vmem:[%s314_s16] sm:$0x1]  ;;  %v344_v26 = vsub.s32 0, %v1274_v10  ;;  %356 = vst [vmem:[%s1360_s27] sm:$0x1] %v1177_v0 }
  0x12   : > { %v362_v5 = vpack.c.bf16 %v361_v2, %v361_v2  ;;  %v348_v25 = vsub.f32 1.0, %v1308_v24  ;;  %v335_v3 = vld [vmem:[%s318_s19] sm:$0xff] }
  0x13   : > { %v359_v6 = vpack.c.bf16 %v358_v4, %v358_v4 }
  0x14   : > { %768 = vrot.lane.b32.xlu1 %v362_v5, %s1179_s11  ;;  %530 = vrot.lane.b32.xlu0 %v362_v5, %s1180_s12  ;;  %v408_v7 = vsel %vm363_vm2, %v362_v5, 0  ;;  %v349_v27 = vmul.f32 -10000.0, %v348_v25 }
  0x15   : > { %1064 = vmatpush3.bf16.xpose.msra.mxu1 %v408_v7  ;;  %v365_v8 = vsel %vm363_vm2, %v359_v6, 0 }
  0x16   : > { %1058 = vmatpush3.bf16.xpose.msra.mxu0 %v365_v8  ;;  %1075 = vmatprep.subr.bf16.mxu1 %v1177_v0  ;;  %v468_v28 = vrot.slane %v349_v27, %v344_v26 }
  0x17   : > { %1069 = vmatprep.subr.bf16.mxu0 %v1177_v0 }
  0x18   : > { %484 = vrot.lane.b32.xlu1 %v359_v6, %s1180_s12  ;;  %649 = vrot.lane.b32.xlu0 %v362_v5, %s1181_s13 }
  0x1c   : > { %1066 = vmatmul.mubr.msk.bf16.vlgmr.msra.gmra.mxu1 %vm363_vm2, %v362_v5  ;;  %604 = vrot.lane.b32.xlu0 %v359_v6, %s1181_s13 }
  0x1d   : > { %723 = vrot.lane.b32.xlu1 %v359_v6, %s1179_s11  ;;  %1060 = vmatmul.mubr.msk.bf16.vlgmr.msra.gmra.mxu0 %vm363_vm2, %v359_v6 }
  0x1e   : > { %1077 = vmatprep.mubr.msk.bf16.mxu1 %vm1178_vm0, %v1177_v0  ;;  %1071 = vmatprep.mubr.msk.bf16.mxu0 %vm1178_vm0, %v1177_v0 }
  0x86   : > { %v769_v12 = vpop.permute.xlu1 %768  ;;  %v531_v13 = vpop.permute.xlu0 %530 }
  0x87   : > { %v533_v14 = vsel %vm363_vm2, %v531_v13, 0  ;;  %v771_v21 = vsel %vm363_vm2, %v769_v12, 0 }
  0x88   : > { %1076 = vmatpush3.bf16.xpose.msra.mxu1 %v533_v14 }
  0x89   : > { %1087 = vmatprep.subr.bf16.mxu1 %v1177_v0 }
  0x8a   : > { %v485_v15 = vpop.permute.xlu1 %484  ;;  %v650_v16 = vpop.permute.xlu0 %649 }
  0x8b   : > { %v487_v17 = vsel %vm363_vm2, %v485_v15, 0  ;;  %v652_v18 = vsel %vm363_vm2, %v650_v16, 0 }
  0x8c   : > { %1070 = vmatpush3.bf16.xpose.msra.mxu0 %v487_v17 }
  0x8d   : > { %1081 = vmatprep.subr.bf16.mxu0 %v1177_v0 }
  0x8e   : > { %v605_v19 = vpop.permute.xlu0 %604 }
  0x8f   : > { %1078 = vmatmul.mubr.msk.bf16.vlgmr.msra.gmra.mxu1 %vm363_vm2, %v531_v13  ;;  %v607_v20 = vsel %vm363_vm2, %v605_v19, 0  ;;  %v724_v22 = vpop.permute.xlu1 %723 }
  0x90   : > { %1088 = vmatpush3.bf16.xpose.msra.mxu1 %v652_v18  ;;  %1089 = vmatprep.mubr.msk.bf16.mxu1 %vm1178_vm0, %v1177_v0  ;;  %v726_v23 = vsel %vm363_vm2, %v724_v22, 0 }
  0x91   : > { %1099 = vmatprep.subr.bf16.mxu1 %v1177_v0 }
  0x93   : > { %1072 = vmatmul.mubr.msk.bf16.vlgmr.msra.gmra.mxu0 %vm363_vm2, %v485_v15 }
  0x94   : > { %1082 = vmatpush3.bf16.xpose.msra.mxu0 %v607_v20  ;;  %1083 = vmatprep.mubr.msk.bf16.mxu0 %vm1178_vm0, %v1177_v0 }
  0x95   : > { %1093 = vmatprep.subr.bf16.mxu0 %v1177_v0 }
  0x97   : > { %1090 = vmatmul.mubr.msk.bf16.vlgmr.msra.gmra.mxu1 %vm363_vm2, %v650_v16 }
  0x98   : > { %1100 = vmatpush3.bf16.xpose.msra.mxu1 %v771_v21  ;;  %1101 = vmatprep.mubr.msk.bf16.mxu1 %vm1178_vm0, %v1177_v0  ;;  %v345_v21 = vrot.slane %v1308_v24, %v344_v26 }
  0x9b   : > { %1084 = vmatmul.mubr.msk.bf16.vlgmr.msra.gmra.mxu0 %vm363_vm2, %v605_v19 }
  0x9c   : > { %1094 = vmatpush3.bf16.xpose.msra.mxu0 %v726_v23  ;;  %1095 = vmatprep.mubr.msk.bf16.mxu0 %vm1178_vm0, %v1177_v0 }
  0x9f   : > { %1102 = vmatmul.mubr.msk.bf16.vlgmr.msra.gmra.mxu1 %vm363_vm2, %v769_v12 }
  0xa3   : > { %1096 = vmatmul.mubr.msk.bf16.vlgmr.msra.gmra.mxu0 %vm363_vm2, %v724_v22 }
  0xdc   : > { %v1314_v29 = vpop.f32.mrf.mxu1 }
  0xdd   : > { %v470_v30 = vadd.f32 %v468_v28, %v1314_v29  ;;  %v1317_v31 = vpop.f32.mrf.mxu0 }
  0xde   : > { %v1067_v32 = vpop.f32.mrf.mxu1  ;;  %v450_v33 = vsub.f32 %v1317_v31, %v1314_v29 }
  0xdf   : > { %v471_v34 = vsel %vm363_vm2, %v470_v30, -inf  ;;  %v1061_v35 = vpop.f32.mrf.mxu0 }
  0xe0   : > { %472 = vmax.xlane.f32.xlu0 %v471_v34  ;;  %v447_v36 = vpop.f32.mrf.mxu1 }
  0xe1   : > { %v404_v37 = vpop.f32.mrf.mxu0 }
  0xe2   : > { %v1068_v38 = vpop.f32.mrf.mxu1 }
  0xe3   : > { %v1062_v39 = vpop.f32.mrf.mxu0 }
 0x14f   : > { %v569_v41 = vpop.f32.mrf.mxu1 }
 0x150   : > { %v589_v42 = vadd.f32 %v569_v41, %v468_v28 }
 0x151   : > { %v1079_v43 = vpop.f32.mrf.mxu1 }
 0x152   : > { %v590_v44 = vsel %vm363_vm2, %v589_v42, -inf }
 0x153   : > { %v572_v45 = vpop.f32.mrf.mxu1  ;;  %591 = vmax.xlane.f32.xlu1 %v590_v44  ;;  %v523_v46 = vpop.f32.mrf.mxu0 }
 0x154   : > { %v575_v47 = vsub.f32 %v523_v46, %v569_v41 }
 0x155   : > { %v1073_v48 = vpop.f32.mrf.mxu0  ;;  %v1080_v49 = vpop.f32.mrf.mxu1 }
 0x157   : > { %v526_v50 = vpop.f32.mrf.mxu0  ;;  %v688_v51 = vpop.f32.mrf.mxu1 }
 0x158   : > { %v708_v52 = vadd.f32 %v688_v51, %v468_v28 }
 0x159   : > { %v1074_v53 = vpop.f32.mrf.mxu0  ;;  %v1091_v54 = vpop.f32.mrf.mxu1 }
 0x15a   : > { %v709_v55 = vsel %vm363_vm2, %v708_v52, -inf }
 0x15b   : > { %v691_v56 = vpop.f32.mrf.mxu1  ;;  %710 = vmax.xlane.f32.xlu0 %v709_v55  ;;  %v643_v57 = vpop.f32.mrf.mxu0 }
 0x15c   : > { %v694_v58 = vsub.f32 %v643_v57, %v688_v51 }
 0x15d   : > { %v1085_v59 = vpop.f32.mrf.mxu0  ;;  %v1092_v60 = vpop.f32.mrf.mxu1 }
 0x15f   : > { %v646_v61 = vpop.f32.mrf.mxu0  ;;  %v807_v62 = vpop.f32.mrf.mxu1 }
 0x160   : > { %v827_v63 = vadd.f32 %v807_v62, %v468_v28 }
 0x161   : > { %v1086_v1 = vpop.f32.mrf.mxu0  ;;  %v1103_v2 = vpop.f32.mrf.mxu1 }
 0x162   : > { %v828_v4 = vsel %vm363_vm2, %v827_v63, -inf }
 0x163   : > { %v810_v5 = vpop.f32.mrf.mxu1  ;;  %829 = vmax.xlane.f32.xlu0 %v828_v4  ;;  %v762_v6 = vpop.f32.mrf.mxu0 }
 0x164   : > { %v813_v7 = vsub.f32 %v762_v6, %v807_v62  ;;  %338 = vperm.xlu1 %1135, %v335_v3  }
 0x165   : > { %v1104_v8 = vpop.f32.mrf.mxu1  ;;  %v1097_v9 = vpop.f32.mrf.mxu0 }
 0x167   : > { %v765_v12 = vpop.f32.mrf.mxu0 }
 0x169   : > { %v473_v13 = vpop.xlane.xlu0 %472  ;;  %v1098_v14 = vpop.f32.mrf.mxu0 }
 0x16a   : > { %v474_v15 = vsub.f32 %v470_v30, %v473_v13 }
 0x16c   : > { %v475_v16 = vmul.f32 1.442695, %v474_v15 }
 0x16e   : > { %1137 = vpow2.f32 %v475_v16 }
 0x17b   : > { %v1329_v17 = vpop.eup %1137 }
 0x17c   : > { %v477_v18 = vsel %vm363_vm2, %v1329_v17, 0.0 }
 0x17d   : > { %478 = vadd.xlane.f32.xlu0 %v477_v18 }
 0x1dc   : > { %v592_v19 = vpop.xlane.xlu1 %591 }
 0x1dd   : > { %v593_v20 = vsub.f32 %v589_v42, %v592_v19 }
 0x1df   : > { %v594_v22 = vmul.f32 1.442695, %v593_v20 }
 0x1e0   : > { %v339_v23 = vpop.permute.xlu1 %338 }
 0x1e1   : > { %1139 = vpow2.f32 %v594_v22  ;;  %v1336_v25 = vmul.f32 %v345_v21, %v339_v23 }
 0x1e3   : > { %v451_v27 = vmul.f32 %v450_v33, %v1336_v25  ;;  %v576_v28 = vmul.f32 %v575_v47, %v1336_v25  ;;  %v695_v32 = vmul.f32 %v694_v58, %v1336_v25  ;;  %v814_v40 = vmul.f32 %v813_v7, %v1336_v25 }
 0x1e4   : > { %v711_v30 = vpop.xlane.xlu0 %710 }
 0x1e5   : > { %v712_v34 = vsub.f32 %v708_v52, %v711_v30  ;;  %v452_v35 = vmul.f32 %v451_v27, %v451_v27  ;;  %v577_v36 = vmul.f32 %v576_v28, %v576_v28  ;;  %v696_v39 = vmul.f32 %v695_v32, %v695_v32 }
 0x1e6   : > { %v815_v43 = vmul.f32 %v814_v40, %v814_v40 }
 0x1e7   : > { %v713_v37 = vmul.f32 1.442695, %v712_v34  ;;  %v453_v24 = vsel %vm363_vm2, %v452_v35, 0.0  ;;  %v578_v38 = vsel %vm363_vm2, %v577_v36, 0.0  ;;  %v697_v42 = vsel %vm363_vm2, %v696_v39, 0.0 }
 0x1e8   : > { %v454_v26 = vrot.slane %v453_v24, 4  ;;  %v579_v31 = vrot.slane %v578_v38, 4  ;;  %v698_v50 = vrot.slane %v697_v42, 4  ;;  %v816_v52 = vsel %vm363_vm2, %v815_v43, 0.0 }
 0x1e9   : > { %1141 = vpow2.f32 %v713_v37  ;;  %v817_v56 = vrot.slane %v816_v52, 4 }
 0x1ea   : > { %v455_v29 = vadd.f32 %v454_v26, %v453_v24  ;;  %v580_v49 = vadd.f32 %v579_v31, %v578_v38  ;;  %v699_v55 = vadd.f32 %v698_v50, %v697_v42  ;;  %v864_v38 = vld [vmem:[%s1360_s27] sm:$0x1] }
 0x1eb   : > { %v818_v62 = vadd.f32 %v817_v56, %v816_v52  ;;  %v844_v52 = vld [vmem:[%s1251_s28] sm:$0x1] }
 0x1ec   : > { %v830_v33 = vpop.xlane.xlu0 %829  ;;  %v456_v41 = vrot.slane %v455_v29, 2  ;;  %v581_v54 = vrot.slane %v580_v49, 2  ;;  %v700_v61 = vrot.slane %v699_v55, 2 }
 0x1ed   : > { %v831_v44 = vsub.f32 %v827_v63, %v830_v33  ;;  %v819_v2 = vrot.slane %v818_v62, 2 }
 0x1ee   : > { %v1140_v45 = vpop.eup %1139  ;;  %v457_v46 = vadd.f32 %v456_v41, %v455_v29  ;;  %v582_v60 = vadd.f32 %v581_v54, %v580_v49  ;;  %v701_v1 = vadd.f32 %v700_v61, %v699_v55 }
 0x1ef   : > { %v832_v47 = vmul.f32 1.442695, %v831_v44  ;;  %v596_v48 = vsel %vm363_vm2, %v1140_v45, 0.0  ;;  %v820_v7 = vadd.f32 %v819_v2, %v818_v62 }
 0x1f0   : > { %597 = vadd.xlane.f32.xlu0 %v596_v48  ;;  %v458_v51 = vrot.slane %v457_v46, 1  ;;  %v583_v63 = vrot.slane %v582_v60, 1  ;;  %v702_v6 = vrot.slane %v701_v1, 1 }
 0x1f1   : > { %1143 = vpow2.f32 %v832_v47  ;;  %v821_v12 = vrot.slane %v820_v7, 1 }
 0x1f2   : > { %v459_v53 = vadd.f32 %v458_v51, %v457_v46  ;;  %v584_v5 = vadd.f32 %v583_v63, %v582_v60  ;;  %v703_v9 = vadd.f32 %v702_v6, %v701_v1 }
 0x1f3   : > { %v822_v15 = vadd.f32 %v821_v12, %v820_v7 }
 0x1f4   : > { %v460_v57 = vsel %vm363_vm2, %v459_v53, 0.0  ;;  %v585_v8 = vsel %vm363_vm2, %v584_v5, 0.0  ;;  %v704_v14 = vsel %vm363_vm2, %v703_v9, 0.0 }
 0x1f5   : > { %461 = vadd.xlane.f32.xlu1 %v460_v57  ;;  %v823_v16 = vsel %vm363_vm2, %v822_v15, 0.0 }
 0x1f6   : > { %v1142_v58 = vpop.eup %1141 }
 0x1f7   : > { %v715_v59 = vsel %vm363_vm2, %v1142_v58, 0.0 }
 0x1f8   : > { %716 = vadd.xlane.f32.xlu0 %v715_v59 }
 0x1fe   : > { %v1144_v3 = vpop.eup %1143 }
 0x1ff   : > { %v834_v4 = vsel %vm363_vm2, %v1144_v3, 0.0 }
 0x200   : > { %835 = vadd.xlane.f32.xlu0 %v834_v4 }
 0x204   : > { %586 = vadd.xlane.f32.xlu0 %v585_v8 }
 0x206   : > { %v479_v13 = vpop.xlane.xlu0 %478 }
 0x207   : > { %1145 = vrcp.f32 %v479_v13 }
 0x208   : > { %705 = vadd.xlane.f32.xlu0 %v704_v14 }
 0x20c   : > { %824 = vadd.xlane.f32.xlu0 %v823_v16 }
 0x214   : > { %v1146_v18 = vpop.eup %1145 }
 0x215   : > { %v481_v19 = vmul.f32 %v1146_v18, %v1329_v17 }
 0x217   : > { %482 = vst.msk [vmem:[%s1368_s7] sm:$0xff] %vm363_vm2, %v481_v19 }
 0x21e   : > { %v601_v23 = vld [vmem:[%s1368_s7] sm:$0xff] }
 0x279   : > { %v598_v20 = vpop.xlane.xlu0 %597 }
 0x27a   : > { %1147 = vrcp.f32 %v598_v20 }
 0x27e   : > { %v462_v32 = vpop.xlane.xlu1 %461 }
 0x281   : > { %v717_v21 = vpop.xlane.xlu0 %716 }
 0x282   : > { %1149 = vrcp.f32 %v717_v21 }
 0x287   : > { %v1148_v22 = vpop.eup %1147 }
 0x288   : > { %v600_v0 = vmul.f32 %v1148_v22, %v1140_v45 }
 0x289   : > { %v836_v27 = vpop.xlane.xlu0 %835 }
 0x28a   : > { %v602_v28 = vadd.f32 %v601_v23, %v600_v0  ;;  %1151 = vrcp.f32 %v836_v27 }
 0x28c   : > { %603 = vst.msk [vmem:[%s1368_s7] sm:$0xff] %vm363_vm2, %v602_v28 }
 0x28d   : > { %v587_v30 = vpop.xlane.xlu0 %586 }
 0x28e   : > { %v588_v36 = vadd.f32 %v587_v30, %v462_v32 }
 0x28f   : > { %v1150_v17 = vpop.eup %1149 }
 0x290   : > { %v719_v35 = vmul.f32 %v1150_v17, %v1142_v58 }
 0x291   : > { %v706_v34 = vpop.xlane.xlu0 %705 }
 0x292   : > { %v707_v26 = vadd.f32 %v706_v34, %v588_v36 }
 0x293   : > { %v720_v37 = vld [vmem:[%s1368_s7] sm:$0xff] }
 0x294   : > { %v721_v24 = vadd.f32 %v720_v37, %v719_v35 }
 0x295   : > { %v825_v39 = vpop.xlane.xlu0 %824 }
 0x296   : > { %722 = vst.msk [vmem:[%s1368_s7] sm:$0xff] %vm363_vm2, %v721_v24  ;;  %v826_v40 = vadd.f32 %v825_v39, %v707_v26 }
 0x297   : > { %v1152_v31 = vpop.eup %1151 }
 0x298   : > { %v866_v29 = vadd.f32 %v864_v38, %v826_v40  ;;  %v838_v33 = vmul.f32 %v1152_v31, %v1144_v3 }
 0x29a   : > { %867 = vst [vmem:[%s1360_s27] sm:$0x1] %v866_v29 }
 0x29d   : > { %v839_v41 = vld [vmem:[%s1368_s7] sm:$0xff] }
 0x29e   : > { %v840_v42 = vadd.f32 %v839_v41, %v838_v33 }
 0x2a0   : > { %841 = vst.msk [vmem:[%s1368_s7] sm:$0xff] %vm363_vm2, %v840_v42 }
 0x2a7   : > { %v842_v43 = vld [vmem:[%s1368_s7] sm:$0xff] }
 0x2a8   : > { %v843_v44 = vmul.f32 %v842_v43, %v1336_v25 }
 0x2aa   : > { %v845_v45 = vsel %vm363_vm2, %v843_v44, 0.0  ;;  %v862_v46 = vsel %vm861_vm3, 0.0, %v843_v44 }
 0x2ab   : > { %v846_v47 = vrot.slane %v845_v45, 4  ;;  %863 = vst.msk [vmem:[%s1368_s7] sm:$0xff] %vm363_vm2, %v862_v46 }
 0x2ad   : > { %v847_v48 = vadd.f32 %v846_v47, %v845_v45 }
 0x2af   : > { %v848_v49 = vrot.slane %v847_v48, 2 }
 0x2b1   : > { %v849_v50 = vadd.f32 %v848_v49, %v847_v48 }
 0x2b3   : > { %v850_v51 = vrot.slane %v849_v50, 1 }
 0x2b5   : > { %v851_v53 = vadd.f32 %v850_v51, %v849_v50 }
 0x2b7   : > { %v852_v54 = vadd.f32 %v851_v53, %v844_v52 }
 0x2b9   : > { %854 = vst.msk [vmem:[%s1251_s28] sm:$0x1] %vm354_vm1, %v852_v54 }
 0x2ba PF: > { %s17_s23 = sadd.s32 1, %s1175_s23   ;;  %s1411_s21 = smov %s1171_s22 }
 0x2bb   : > { %p14_p5 = scmp.ge.s32.totalorder %s17_s23, 4   ;;  %s1412_s22 = smov %s1414_s24 }
 0x2bd   :  { %16 = sbr.rel (!%p14_p5) target bundleno = 2 (0x2), region = 103 }

</bundles_post_ra>
